<compile_context>
chip_gen: v7x
topology: tpu7x:2x2x1
jax: 0.10.0
libtpu: 0.0.40
codegen_flags: <defaults>
</compile_context>

<pallas_src>
import jax
import jax.numpy as jnp
from jax.experimental import pallas as pl
from jax.experimental.pallas import tpu as pltpu

# ---- logical model dimensions (the wrapped MLP) ----
BATCH = 8
IN_F = 32
HID_F = 64
OUT_F = 16

# ---- output kept lane-dense (128 wide) for an unmasked vst ----
LANE = 128
OUT_PAD = LANE


def _round_up(n: int, m: int) -> int:
    return ((n + m - 1) // m) * m


def mlp_kernel(x_ref, w1_ref, b1_ref, w2_ref, b2_ref, o_ref):
    """o = relu(x @ W1 + b1) @ W2 + b2 for one (tb, 32) batch tile.

    x/W1/W2/h are bf16 (MXU-native) with f32 accumulation; biases are added
    in f32.  W2/b2 are zero-padded 16 -> 128 output lanes, so padded output
    columns are exactly zero and are sliced off in the wrapper.
    """
    x = x_ref[...]                                                     # (tb, 32) bf16
    h = jnp.dot(x, w1_ref[...], preferred_element_type=jnp.float32)   # (tb, 64) f32
    h = jnp.maximum(h + b1_ref[...], 0.0)                             # bias + ReLU, f32
    h = h.astype(jnp.bfloat16)                                        # back to MXU dtype
    o = jnp.dot(h, w2_ref[...], preferred_element_type=jnp.float32)   # (tb, 128) f32
    o_ref[...] = (o + b2_ref[...]).astype(jnp.bfloat16)               # lane-dense bf16 store


def _choose_tile_b(B: int, tile_b: int) -> int:
    """Batch tile: multiple of 16, <= tile_b, and >= 2 grid steps when the
    batch is large enough so v7x's second TensorCore gets work."""
    b16 = _round_up(B, 16)
    tb = min(tile_b, b16)
    if b16 >= 32:
        tb = min(tb, _round_up((b16 + 1) // 2, 16))
    return max(16, _round_up(tb, 16))


def neural_network_forward(x, w1p, b1p, w2p, b2p, *, tile_b: int = 1024):
    """Pallas wrapper.

    x:   [B, IN_F] (any float dtype)
    w1p: [32, 64]  bf16, b1p: [1, 64]  f32,
    w2p: [64, 128] bf16, b2p: [1, 128] f32   (from prepare_params)
    Returns [B, OUT_F] f32.
    """
    B = x.shape[0]
    tb = _choose_tile_b(B, tile_b)
    b_pad = _round_up(B, tb)

    x_bf = x.astype(jnp.bfloat16)
    x_p = jnp.pad(x_bf, ((0, b_pad - B), (0, 0))) if b_pad != B else x_bf

    out = pl.pallas_call(
        mlp_kernel,
        out_shape=jax.ShapeDtypeStruct((b_pad, OUT_PAD), jnp.bfloat16),
        grid=(b_pad // tb,),
        in_specs=[
            pl.BlockSpec((tb, IN_F), lambda i: (i, 0)),        # batch-tiled activations
            pl.BlockSpec((IN_F, HID_F), lambda i: (0, 0)),     # resident W1
            pl.BlockSpec((1, HID_F), lambda i: (0, 0)),        # resident b1
            pl.BlockSpec((HID_F, OUT_PAD), lambda i: (0, 0)),  # resident W2 (padded cols)
            pl.BlockSpec((1, OUT_PAD), lambda i: (0, 0)),      # resident b2 (padded cols)
        ],
        out_specs=pl.BlockSpec((tb, OUT_PAD), lambda i: (i, 0)),
        compiler_params=pltpu.CompilerParams(
            dimension_semantics=("parallel",),
        ),
    )(x_p, w1p, b1p, w2p, b2p)

    return out[:B, :OUT_F].astype(jnp.float32)


def init_params(key):
    """PyTorch nn.Linear-style init: U(-1/sqrt(fan_in), 1/sqrt(fan_in)).
    Weights stored as [in, out] (i.e. PyTorch weight transposed)."""
    k1, k2, k3, k4 = jax.random.split(key, 4)
    lim1 = 1.0 / jnp.sqrt(jnp.float32(IN_F))
    lim2 = 1.0 / jnp.sqrt(jnp.float32(HID_F))
    w1 = jax.random.uniform(k1, (IN_F, HID_F), jnp.float32, -lim1, lim1)
    b1 = jax.random.uniform(k2, (1, HID_F), jnp.float32, -lim1, lim1)
    w2 = jax.random.uniform(k3, (HID_F, OUT_F), jnp.float32, -lim2, lim2)
    b2 = jax.random.uniform(k4, (1, OUT_F), jnp.float32, -lim2, lim2)
    return w1, b1, w2, b2


def prepare_params(w1, b1, w2, b2):
    """One-time: cast weights to bf16; pad only the OUTPUT feature dim to 128
    lanes (so the final store is lane-dense).  Input / hidden dims are left at
    their natural 32 / 64 widths — the MXU pads internally at zero HBM cost."""
    w1p = w1.astype(jnp.bfloat16)                                  # (32, 64)
    b1p = b1.astype(jnp.float32)                                   # (1, 64)
    w2p = jnp.pad(w2, ((0, 0), (0, OUT_PAD - OUT_F))).astype(jnp.bfloat16)  # (64, 128)
    b2p = jnp.pad(b2, ((0, 0), (0, OUT_PAD - OUT_F))).astype(jnp.float32)   # (1, 128)
    return w1p, b1p, w2p, b2p


def reference_forward(x, w1, b1, w2, b2):
    """Plain-JAX reference with the same bf16 rounding as the kernel
    (operands, hidden activations, and the final bf16 output store)."""
    xb = x.astype(jnp.bfloat16).astype(jnp.float32)
    w1b = w1.astype(jnp.bfloat16).astype(jnp.float32)
    w2b = w2.astype(jnp.bfloat16).astype(jnp.float32)
    h = jnp.maximum(xb @ w1b + b1, 0.0)
    hb = h.astype(jnp.bfloat16).astype(jnp.float32)
    o = hb @ w2b + b2
    return o.astype(jnp.bfloat16).astype(jnp.float32)


if __name__ == "__main__":
    key = jax.random.PRNGKey(0)
    k_x, k_p, k_x2 = jax.random.split(key, 3)

    w1, b1, w2, b2 = init_params(k_p)
    w1p, b1p, w2p, b2p = prepare_params(w1, b1, w2, b2)

    # --- small batch (single grid step) ---
    x = jax.random.normal(k_x, (BATCH, IN_F), jnp.float32)
    out = jax.block_until_ready(neural_network_forward(x, w1p, b1p, w2p, b2p))
    ref = reference_forward(x, w1, b1, w2, b2)
    assert out.shape == (BATCH, OUT_F)
    assert jnp.allclose(out, ref, atol=2e-2, rtol=1e-2), float(jnp.max(jnp.abs(out - ref)))

    # --- ragged batch exercising the batch grid (multiple parallel steps) ---
    x2 = jax.random.normal(k_x2, (200, IN_F), jnp.float32)
    out2 = jax.block_until_ready(
        neural_network_forward(x2, w1p, b1p, w2p, b2p, tile_b=64)
    )
    ref2 = reference_forward(x2, w1, b1, w2, b2)
    assert out2.shape == (200, OUT_F)
    assert jnp.allclose(out2, ref2, atol=2e-2, rtol=1e-2), float(jnp.max(jnp.abs(out2 - ref2)))

    print("KERNEL_OK")
</pallas_src>

<mosaic_0001>
module attributes {stable_mosaic.version = 11 : i64} {
  func.func @mlp_kernel(%arg0: i32, %arg1: memref<16x32xbf16, #tpu.memory_space<vmem>>, %arg2: memref<32x64xbf16, #tpu.memory_space<vmem>>, %arg3: memref<1x64xf32, #tpu.memory_space<vmem>>, %arg4: memref<64x128xbf16, #tpu.memory_space<vmem>>, %arg5: memref<1x128xf32, #tpu.memory_space<vmem>>, %arg6: memref<16x128xbf16, #tpu.memory_space<vmem>>) attributes {dimension_semantics = [#tpu.dimension_semantics<parallel>], iteration_bounds = array<i64: 1>, scalar_prefetch = 0 : i64, scratch_operands = 0 : i64, tpu.core_type = #tpu.core_type<tc>, window_params = [{transform_indices = @transform_0, window_bounds = array<i64: 16, 32>}, {pipeline_mode = #tpu.pipeline_mode<synchronous>, transform_indices = @transform_1, window_bounds = array<i64: 32, 64>}, {pipeline_mode = #tpu.pipeline_mode<synchronous>, transform_indices = @transform_2, window_bounds = array<i64: 1, 64>}, {pipeline_mode = #tpu.pipeline_mode<synchronous>, transform_indices = @transform_3, window_bounds = array<i64: 64, 128>}, {pipeline_mode = #tpu.pipeline_mode<synchronous>, transform_indices = @transform_4, window_bounds = array<i64: 1, 128>}, {transform_indices = @transform_5, window_bounds = array<i64: 16, 128>}]} {
    %c0 = arith.constant 0 : index
    %c0_0 = arith.constant 0 : index
    %0 = vector.load %arg1[%c0, %c0_0] : memref<16x32xbf16, #tpu.memory_space<vmem>>, vector<16x32xbf16>
    %c0_1 = arith.constant 0 : index
    %c0_2 = arith.constant 0 : index
    %1 = vector.load %arg2[%c0_1, %c0_2] : memref<32x64xbf16, #tpu.memory_space<vmem>>, vector<32x64xbf16>
    %cst = arith.constant dense<0.000000e+00> : vector<16x64xf32>
    %2 = tpu.matmul %0, %1, %cst {dimension_numbers = #tpu.dot_dimension_numbers<[1], [0], [0], [1], [0, 0, 1, 1], [], []>} : vector<16x32xbf16>, vector<32x64xbf16>, vector<16x64xf32> -> vector<16x64xf32>
    %c0_3 = arith.constant 0 : index
    %c0_4 = arith.constant 0 : index
    %3 = vector.load %arg3[%c0_3, %c0_4] : memref<1x64xf32, #tpu.memory_space<vmem>>, vector<1x64xf32>
    %4 = vector.broadcast %3 : vector<1x64xf32> to vector<16x64xf32>
    %5 = arith.addf %2, %4 : vector<16x64xf32>
    %cst_5 = arith.constant 0.000000e+00 : f32
    %6 = vector.broadcast %cst_5 : f32 to vector<16x64xf32>
    %7 = arith.maximumf %5, %6 : vector<16x64xf32>
    %8 = arith.truncf %7 : vector<16x64xf32> to vector<16x64xbf16>
    %c0_6 = arith.constant 0 : index
    %c0_7 = arith.constant 0 : index
    %9 = vector.load %arg4[%c0_6, %c0_7] : memref<64x128xbf16, #tpu.memory_space<vmem>>, vector<64x128xbf16>
    %cst_8 = arith.constant dense<0.000000e+00> : vector<16x128xf32>
    %10 = tpu.matmul %8, %9, %cst_8 {dimension_numbers = #tpu.dot_dimension_numbers<[1], [0], [0], [1], [0, 0, 1, 1], [], []>} : vector<16x64xbf16>, vector<64x128xbf16>, vector<16x128xf32> -> vector<16x128xf32>
    %c0_9 = arith.constant 0 : index
    %c0_10 = arith.constant 0 : index
    %11 = vector.load %arg5[%c0_9, %c0_10] : memref<1x128xf32, #tpu.memory_space<vmem>>, vector<1x128xf32>
    %12 = vector.broadcast %11 : vector<1x128xf32> to vector<16x128xf32>
    %13 = arith.addf %10, %12 : vector<16x128xf32>
    %14 = arith.truncf %13 : vector<16x128xf32> to vector<16x128xbf16>
    %c0_11 = arith.constant 0 : index
    %c0_12 = arith.constant 0 : index
    %15 = vector.load %arg6[%c0_11, %c0_12] : memref<16x128xbf16, #tpu.memory_space<vmem>>, vector<16x128xbf16>
    tpu.vector_store %arg6[%c0_11, %c0_12], %14 {strides = array<i32>} : memref<16x128xbf16, #tpu.memory_space<vmem>>, vector<16x128xbf16>,
    return
  }
  func.func @transform_0(%arg0: i32) -> (i32, i32) {
    %c0_i32 = arith.constant 0 : i32
    %c0_i32_0 = arith.constant 0 : i32
    return %arg0, %c0_i32 : i32, i32
  }
  func.func @transform_1(%arg0: i32) -> (i32, i32) {
    %c0_i32 = arith.constant 0 : i32
    %c0_i32_0 = arith.constant 0 : i32
    %c0_i32_1 = arith.constant 0 : i32
    return %c0_i32, %c0_i32_0 : i32, i32
  }
  func.func @transform_2(%arg0: i32) -> (i32, i32) {
    %c0_i32 = arith.constant 0 : i32
    %c0_i32_0 = arith.constant 0 : i32
    %c0_i32_1 = arith.constant 0 : i32
    return %c0_i32, %c0_i32_0 : i32, i32
  }
  func.func @transform_3(%arg0: i32) -> (i32, i32) {
    %c0_i32 = arith.constant 0 : i32
    %c0_i32_0 = arith.constant 0 : i32
    %c0_i32_1 = arith.constant 0 : i32
    return %c0_i32, %c0_i32_0 : i32, i32
  }
  func.func @transform_4(%arg0: i32) -> (i32, i32) {
    %c0_i32 = arith.constant 0 : i32
    %c0_i32_0 = arith.constant 0 : i32
    %c0_i32_1 = arith.constant 0 : i32
    return %c0_i32, %c0_i32_0 : i32, i32
  }
  func.func @transform_5(%arg0: i32) -> (i32, i32) {
    %c0_i32 = arith.constant 0 : i32
    %c0_i32_0 = arith.constant 0 : i32
    return %arg0, %c0_i32 : i32, i32
  }
}

</mosaic_0001>

<bundles_post_ra>
// kernel: tpu_custom_call.1
= control target key start
LH: loop header
LB: loop body
LE: loop exit
PB: predicated region body
PF: predicated region fallthrough
CT: control target
= control target key end

     0   :  { %10 = vsyncpa [#allocation3], 0  ;;  %s521_s0 = inlined_call_operand.hbm [shape: bf16[16,32], index: 0, kind: input, shape index: {}]   ;;  %s522_s1 = inlined_call_operand.hbm [shape: bf16[32,64], index: 1, kind: input, shape index: {}]   ;;  %s523_s2 = inlined_call_operand.vmem [shape: f32[1,64], index: 2, kind: input, shape index: {}]   ;;  %s524_s3 = inlined_call_operand.hbm [shape: bf16[64,128], index: 3, kind: input, shape index: {}]   ;;  %s525_s4 = inlined_call_operand.vmem [shape: f32[1,128], index: 4, kind: input, shape index: {}]   ;;  %s526_s5 = inlined_call_operand.hbm [shape: bf16[16,128], index: 5, kind: output, shape index: {}]  }
   0x1   :  { %11 = vsyncpa [#allocation6], 0 }
   0x2   :  { %12 = vsyncpa [#allocation4], 0  ;;  %s410_s18 = smov [#allocation5]   ;;  %s411_s20 = smov [#allocation2]  }
   0x3   :  { %s30_s19 = sshll.u32 %s410_s18, 4  ;;  %s18_s21 = sshll.u32 %s411_s20, 4  ;;  %s31_s19 = int_to_ptr.vmem [resolvable:$true] %s30_s19  ;;  %s448_s21 = int_to_ptr.vmem [resolvable:$true] %s18_s21 }
   0x4   :  { %s316_s24 = scalar_lea.hbm %s522_s1, 256 }
   0x5   :  { %p317_p0 = scmp.ne.s32.totalorder %s522_s1, %s316_s24  ;;  %p320_p1 = scmp.lt.u32.totalorder %s316_s24, %s522_s1 }
   0x7   :  { %p322_p2 = pnand %p320_p1, %p317_p0 }
   0x9   :  { %325 = shalt.err (!%p322_p2)
}
   0xa   :  { %s326_s29 = scalar_lea.vmem %s31_s19, 256  ;;  %p331_p4 = scmp.lt.s32.totalorder %s31_s19, %s31_s19 }
   0xb   :  { %p327_p3 = scmp.ne.s32.totalorder %s31_s19, %s326_s29  ;;  %p332_p5 = scmp.lt.s32.totalorder %s326_s29, %s326_s29 }
   0xd   :  { %p333_p6 = por %p332_p5, %p331_p4 }
   0xf   :  { %p334_p7 = pnand %p333_p6, %p327_p3 }
  0x11   :  { %337 = shalt.err (!%p334_p7)
}
  0x12   :  { %s412_s30 = smov 64   ;;  %s413_s6 = smov 4  }
  0x13   :  { %36 = dma.hbm_to_vmem [thread:$0]  %s522_s1, 256, %s31_s19, [#allocation6], %s412_s30, %s412_s30, %s413_s6  }
  0x14   :  { %s338_s11 = scalar_lea.hbm %s521_s0, 128 }
  0x15   :  { %p339_p8 = scmp.ne.s32.totalorder %s521_s0, %s338_s11  ;;  %p342_p9 = scmp.lt.u32.totalorder %s338_s11, %s521_s0 }
  0x17   :  { %p344_p10 = pnand %p342_p9, %p339_p8 }
  0x19   :  { %347 = shalt.err (!%p344_p10)
}
  0x1a   :  { %s348_s16 = scalar_lea.vmem %s448_s21, 128  ;;  %p353_p12 = scmp.lt.s32.totalorder %s448_s21, %s448_s21 }
  0x1b   :  { %p349_p11 = scmp.ne.s32.totalorder %s448_s21, %s348_s16  ;;  %p354_p13 = scmp.lt.s32.totalorder %s348_s16, %s348_s16 }
  0x1d   :  { %p355_p0 = por %p354_p13, %p353_p12 }
  0x1f   :  { %p356_p1 = pnand %p355_p0, %p349_p11 }
  0x21   :  { %359 = shalt.err (!%p356_p1)
}
  0x22   :  { %24 = dma.hbm_to_vmem [thread:$0]  %s521_s0, 128, %s448_s21, [#allocation3], %s412_s30, %s412_s30, %s413_s6  }
  0x23   :  { %s414_s18 = smov [#allocation7]   ;;  %s360_s23 = scalar_lea.hbm %s524_s3, 512 }
  0x24   :  { %s44_s19 = sshll.u32 %s414_s18, 4  ;;  %p361_p2 = scmp.ne.s32.totalorder %s524_s3, %s360_s23  ;;  %s45_s19 = int_to_ptr.vmem [resolvable:$true] %s44_s19 }
  0x25   :  { %p364_p3 = scmp.lt.u32.totalorder %s360_s23, %s524_s3 }
  0x27   :  { %p366_p4 = pnand %p364_p3, %p361_p2 }
  0x29   :  { %369 = shalt.err (!%p366_p4)
}
  0x2a   :  { %s370_s28 = scalar_lea.vmem %s45_s19, 512  ;;  %p375_p6 = scmp.lt.s32.totalorder %s45_s19, %s45_s19 }
  0x2b   :  { %p371_p5 = scmp.ne.s32.totalorder %s45_s19, %s370_s28  ;;  %p376_p7 = scmp.lt.s32.totalorder %s370_s28, %s370_s28 }
  0x2d   :  { %p377_p8 = por %p376_p7, %p375_p6 }
  0x2f   :  { %p378_p9 = pnand %p377_p8, %p371_p5 }
  0x31   :  { %381 = shalt.err (!%p378_p9)
}
  0x32   :  { %50 = dma.hbm_to_vmem [thread:$0]  %s524_s3, 512, %s45_s19, [#allocation6], %s412_s30, %s412_s30, %s413_s6  }
  0x33   :  { %404 = dma.done.wait [#allocation3], 128  }
  0x34   :  { %405 = vsyncadd [#allocation3], 4294967168 }
  0x35   :  { %406 = dma.done.wait [#allocation6], 768  }
  0x36   :  { %407 = vsyncadd [#allocation6], 4294966528  ;;  %v415_v0 = vmov 0.0   ;;  %vm416_vm0 = vmmov 0   ;;  %v309_v1 = vld [vmem:[#allocation5] sm:$0xff]   ;;  %v310_v2 = vld [vmem:[#allocation5 + $0x8] sm:$0xff]  }
  0x37   :  { %281 = vmatprep.subr.bf16.mxu0 %v415_v0  ;;  %285 = vmatprep.mubr.msk.bf16.mxu0 %vm416_vm0, %v415_v0  ;;  %v312_v3 = vld [vmem:[#allocation7] sm:$0xff]   ;;  %v311_v4 = vld [vmem:[#allocation2] sm:$0xff]   ;;  %vm93_vm1 = vcmask 261120   ;;  %v314_v6 = vld [vmem:[#allocation7 + $0x10] sm:$0xff]   ;;  %vm180_vm2 = vcmask 523264   ;;  %s417_s9 = smov [#allocation8]  }
  0x38   :  { %289 = vmatprep.subr.bf16.mxu1 %v415_v0  ;;  %297 = vmatprep.mubr.msk.bf16.mxu1 %vm416_vm0, %v415_v0  ;;  %v313_v5 = vld [vmem:[#allocation7 + $0x8] sm:$0xff]   ;;  %v315_v7 = vld [vmem:[#allocation7 + $0x18] sm:$0xff]  }
  0x39   :  { %282 = vmatpush3.bf16.msra.mxu0 %v309_v1  ;;  %290 = vmatpush3.bf16.msra.mxu1 %v312_v3  ;;  %v253_v8 = vld [vmem:[%s523_s2] ss:$0 sm:$0xff]  ;;  %s240_s2 = sshll.u32 %s417_s9, 4  ;;  %s241_s2 = int_to_ptr.vmem [resolvable:$true] %s240_s2 }
  0x3a   :  { %283 = vmatprep.subr.bf16.mxu0 %v415_v0  ;;  %291 = vmatprep.subr.bf16.mxu1 %v415_v0  ;;  %v258_v18 = vld [vmem:[%s525_s4] ss:$0 sm:$0xff]  ;;  %s382_s10 = scalar_lea.vmem %s241_s2, 128  ;;  %p387_p11 = scmp.lt.s32.totalorder %s241_s2, %s241_s2 }
  0x3b   :  { %p383_p10 = scmp.ne.s32.totalorder %s241_s2, %s382_s10  ;;  %p388_p12 = scmp.lt.s32.totalorder %s382_s10, %s382_s10 }
  0x3d   :  { %284 = vmatpush3.bf16.msra.mxu0 %v310_v2  ;;  %292 = vmatpush3.bf16.msra.mxu1 %v313_v5  ;;  %p389_p13 = por %p388_p12, %p387_p11 }
  0x3e   :  { %293 = vmatprep.subr.bf16.mxu1 %v415_v0 }
  0x3f   :  { %p390_p0 = pnand %p389_p13, %p383_p10 }
  0x40   :  { %286 = vmatmul.mubr.msk.bf16.vlgmr.msra.gmra.mrb[0].mxu0 %vm93_vm1, %v311_v4 }
  0x41   :  { %294 = vmatpush3.bf16.msra.mxu1 %v314_v6 }
  0x42   :  { %295 = vmatprep.subr.bf16.mxu1 %v415_v0 }
  0x45   :  { %296 = vmatpush3.bf16.msra.mxu1 %v315_v7 }
 0x113   :  { %v131_v9 = vpop.f32.mrb[0].mxu0 }
 0x114   :  { %v132_v10 = vadd.f32 %v253_v8, %v131_v9  ;;  %v287_v11 = vpop.f32.mrb[1].mxu0 }
 0x115   :  { %v134_v12 = vpop.f32.mrb[2].mxu0 }
 0x116   :  { %v135_v13 = vadd.f32 %v253_v8, %v134_v12  ;;  %v288_v14 = vpop.f32.mrb[3].mxu0  ;;  %v138_v15 = vmax.f32 %v132_v10, 0.0 }
 0x118   :  { %v139_v16 = vmax.f32 %v135_v13, 0.0 }
 0x11a   :  { %v140_v17 = vpack.c.bf16 %v139_v16, %v138_v15 }
 0x11c   :  { %298 = vmatmul.mubr.msk.bf16.vlgmr.msra.gmra.mrb[0].mxu1 %vm180_vm2, %v140_v17 }
 0x1ef   :  { %v218_v19 = vpop.f32.mrb[0].mxu1 }
 0x1f0   :  { %v299_v20 = vpop.f32.mrb[1].mxu1  ;;  %v219_v22 = vadd.f32 %v258_v18, %v218_v19 }
 0x1f1   :  { %v221_v21 = vpop.f32.mrb[2].mxu1 }
 0x1f2   :  { %v222_v23 = vadd.f32 %v258_v18, %v221_v21  ;;  %v300_v24 = vpop.f32.mrb[3].mxu1 }
 0x1f4   :  { %v271_v25 = vpack.c.bf16 %v222_v23, %v219_v22 }
 0x1f6   :  { %272 = vst [vmem:[#allocation8] sm:$0xff] %v271_v25  }
 0x1f7   :  { %393 = shalt.err (!%p390_p0)
}
 0x1f8   :  { %s394_s12 = scalar_lea.hbm %s526_s5, 128 }
 0x1f9   :  { %p395_p1 = scmp.ne.s32.totalorder %s526_s5, %s394_s12  ;;  %p398_p2 = scmp.lt.u32.totalorder %s394_s12, %s526_s5 }
 0x1fb   :  { %p400_p3 = pnand %p398_p2, %p395_p1 }
 0x1fd   :  { %403 = shalt.err (!%p400_p3)
}
 0x1fe   :  { %246 = dma.vmem_to_hbm [thread:$0]  %s241_s2, 128, %s526_s5, [#allocation4], %s412_s30, %s412_s30, %s413_s6  }
 0x1ff   :  { %408 = dma.done.wait [#allocation4], 128  }
 0x200   :  { %409 = vsyncadd [#allocation4], 4294967168 }
 0x201   :  { %250 = vsyncpa [#allocation3], 1 }
 0x202   :  { %251 = vsyncpa [#allocation6], 1 }
 0x203   :  { %252 = vsyncpa [#allocation4], 1 }

</bundles_post_ra>
